<compile_context>
chip_gen: v6e
topology: v6e:2x2x1
jax: 0.10.0
libtpu: 0.0.40
codegen_flags: <defaults>
</compile_context>

<pallas_src>
import functools

import jax
import jax.numpy as jnp
from jax.experimental import pallas as pl
from jax.experimental.pallas import tpu as pltpu

_VMEM_LIMIT_BYTES = 32 * 1024 * 1024    # scoped-VMEM budget (safe on v5e/v6e/v7x)
_BLOCK_BUDGET_BYTES = 8 * 1024 * 1024   # double-buffered block bytes for the tiled path
_FUSED_INPUT_BYTES = 2 * 1024 * 1024    # f32-equivalent bytes of x below which the
                                        # single-pass fused kernel is used


def _round_up(a, b):
    return (a + b - 1) // b * b


def _plan_tiles(n_rows, c, itemsize):
    """Static tiling plan for the two-pass path.

    Returns (k, tr_s):
      k    = rows folded into lanes in the normalize pass (lane-dense stores for
             C < 128); constrained to divide both 128 // C and n_rows.
      tr_s = unfolded rows per grid step (stats pass); tr_s // k folded rows per
             step in the normalize pass.
    """
    if c < 128 and 128 % c == 0:
        k = 128 // c
        while k > 1 and n_rows % k:
            k //= 2
    else:
        k = 1
    cf = k * c
    sub = 8 * max(1, 4 // itemsize)       # sublane granularity (16 for bf16)
    m = max(128, k * sub)                 # row granularity: (1, tr_s) stays lane-aligned,
                                          # tr_s // k stays sublane-aligned
    c_pad = _round_up(c, 128)
    cf_pad = _round_up(cf, 128)
    stats_row = 2 * c_pad * itemsize + 2 * 4          # x + valid, double-buffered
    norm_row = 2 * 2 * cf_pad * itemsize // k         # x + out, double-buffered
    per_row = max(stats_row, norm_row)
    cap = max(m, _BLOCK_BUDGET_BYTES // per_row // m * m)
    if n_rows < m:
        return k, n_rows                  # single full-array block (exact dims are legal)
    return k, min(cap, n_rows // m * m)   # tr_s <= n_rows; last tile may be partial


# --------------------------------------------------------------------------- #
# kernels
# --------------------------------------------------------------------------- #

def _stats_kernel(valid_ref, x_ref, s_ref, ss_ref, cnt_ref, *, n_rows, tile_rows):
    """Accumulate masked per-channel sum / sum-of-squares / valid count."""
    @pl.when(pl.program_id(0) == 0)
    def _init():
        s_ref[...] = jnp.zeros_like(s_ref)
        ss_ref[...] = jnp.zeros_like(ss_ref)
        cnt_ref[...] = jnp.zeros_like(cnt_ref)

    # In-bounds row mask for the (possibly partial) last tile: the OOB region of
    # the VMEM block holds stale data, so sanitize both x and the valid row.
    rem = n_rows - pl.program_id(0) * tile_rows
    lane_ids = jax.lax.broadcasted_iota(jnp.int32, (1, tile_rows), 1)
    row_ids = jax.lax.broadcasted_iota(jnp.int32, (tile_rows, 1), 0)

    v = jnp.where(lane_ids < rem, valid_ref[...], 0.0)            # (1, TR_S)
    x = jnp.where(row_ids < rem, x_ref[...].astype(jnp.float32), 0.0)  # (TR_S, C)

    # Masked cross-row reductions on the (otherwise idle) MXU; accumulate in f32.
    s_ref[...] += jnp.dot(v, x, preferred_element_type=jnp.float32)
    ss_ref[...] += jnp.dot(v, x * x, preferred_element_type=jnp.float32)
    cnt_ref[...] += jnp.sum(v, keepdims=True)


def _normalize_kernel(x_ref, scale_ref, shift_ref, o_ref):
    """o = x * scale + shift over (possibly row-folded, lane-dense) tiles."""
    x = x_ref[...].astype(jnp.float32)
    o_ref[...] = (x * scale_ref[...] + shift_ref[...]).astype(o_ref.dtype)


def _fused_kernel(valid_ref, x_ref, w_ref, b_ref, o_ref, s_ref, ss_ref, cnt_ref,
                  *, eps):
    """Single-pass MaskBatchNorm when everything fits in VMEM: x is read once."""
    x = x_ref[...].astype(jnp.float32)                              # (N, C)
    v = valid_ref[...]                                              # (1, N)
    s = jnp.dot(v, x, preferred_element_type=jnp.float32)           # (1, C)
    ss = jnp.dot(v, x * x, preferred_element_type=jnp.float32)      # (1, C)
    n = jnp.sum(v, keepdims=True)                                   # (1, 1)

    mean = s / n
    sumvar = ss - s * mean
    inv_std = jax.lax.rsqrt(jnp.maximum(sumvar / n, eps))           # clamp(eps) ** -0.5
    scale = inv_std * w_ref[...]
    shift = b_ref[...] - mean * scale

    o_ref[...] = (x * scale + shift).astype(o_ref.dtype)
    s_ref[...] = s
    ss_ref[...] = ss
    cnt_ref[...] = n


# --------------------------------------------------------------------------- #
# wrapper
# --------------------------------------------------------------------------- #

@functools.partial(jax.jit,
                   static_argnames=("eps", "momentum", "max_fused_bytes"))
def mask_batch_norm(x, pad_mask, weight, bias, running_mean, running_var, *,
                    eps=1e-5, momentum=0.1, max_fused_bytes=_FUSED_INPUT_BYTES):
    """Forward pass of MaskBatchNorm (training / batch-stats path).

    x:        (T, B, C) or (B, C) (the `shaped_input` case)
    pad_mask: (B, T) bool, True = padding, or None
    Returns (output, new_running_mean, new_running_var).
    """
    # TODO(synk): eval path (use_run=True -> normalize with running stats) and
    # affine=False are not implemented; this is the default training path.
    shaped_input = x.ndim == 2
    if shaped_input:
        x = x[None, ...]                          # (1, B, C)
    T, B, C = x.shape
    N = T * B
    x2 = x.reshape(N, C)                          # contiguous, free reshape

    # Lane-dense validity row (1.0 = not padded), seq-major to match x.reshape(N, C).
    if pad_mask is None:
        valid = jnp.ones((1, N), jnp.float32)
    else:
        valid = jnp.logical_not(pad_mask).T.reshape(1, N).astype(jnp.float32)

    w32 = weight.astype(jnp.float32)
    b32 = bias.astype(jnp.float32)
    itemsize = jnp.dtype(x.dtype).itemsize

    if N * C * 4 <= max_fused_bytes:
        # ---- fused single pass: x read once, scale/shift folded in-kernel ----
        out2, s, ss, cnt = pl.pallas_call(
            functools.partial(_fused_kernel, eps=eps),
            grid=(1,),
            in_specs=[
                pl.BlockSpec((1, N), lambda i: (0, 0)),
                pl.BlockSpec((N, C), lambda i: (0, 0)),
                pl.BlockSpec((1, C), lambda i: (0, 0)),
                pl.BlockSpec((1, C), lambda i: (0, 0)),
            ],
            out_specs=(
                pl.BlockSpec((N, C), lambda i: (0, 0)),
                pl.BlockSpec((1, C), lambda i: (0, 0)),
                pl.BlockSpec((1, C), lambda i: (0, 0)),
                pl.BlockSpec((1, 1), lambda i: (0, 0)),
            ),
            out_shape=(
                jax.ShapeDtypeStruct((N, C), x.dtype),
                jax.ShapeDtypeStruct((1, C), jnp.float32),
                jax.ShapeDtypeStruct((1, C), jnp.float32),
                jax.ShapeDtypeStruct((1, 1), jnp.float32),
            ),
            compiler_params=pltpu.CompilerParams(
                dimension_semantics=("arbitrary",),
                vmem_limit_bytes=_VMEM_LIMIT_BYTES),
        )(valid, x2, w32.reshape(1, C), b32.reshape(1, C))
        s, ss, n = s[0], ss[0], cnt[0, 0]
        out = out2.reshape(T, B, C)
    else:
        # ---- tiled two-pass path (no HBM padding: ragged tail handled in-kernel) ----
        k, tr_s = _plan_tiles(N, C, itemsize)
        num_tiles = pl.cdiv(N, tr_s)

        s, ss, cnt = pl.pallas_call(
            functools.partial(_stats_kernel, n_rows=N, tile_rows=tr_s),
            grid=(num_tiles,),
            in_specs=[
                pl.BlockSpec((1, tr_s), lambda i: (0, i)),
                pl.BlockSpec((tr_s, C), lambda i: (i, 0)),
            ],
            out_specs=(
                pl.BlockSpec((1, C), lambda i: (0, 0)),
                pl.BlockSpec((1, C), lambda i: (0, 0)),
                pl.BlockSpec((1, 1), lambda i: (0, 0)),
            ),
            out_shape=(
                jax.ShapeDtypeStruct((1, C), jnp.float32),
                jax.ShapeDtypeStruct((1, C), jnp.float32),
                jax.ShapeDtypeStruct((1, 1), jnp.float32),
            ),
            compiler_params=pltpu.CompilerParams(
                dimension_semantics=("arbitrary",),
                vmem_limit_bytes=_VMEM_LIMIT_BYTES),
        )(valid, x2)
        s, ss, n = s[0], ss[0], cnt[0, 0]

        # glue on (C,) in f32: fold mean / inv_std / affine into scale & shift
        mean_b = s / n
        sumvar_b = ss - s * mean_b
        inv_std = jax.lax.rsqrt(jnp.maximum(sumvar_b / n, eps))
        scale_c = inv_std * w32
        shift_c = b32 - mean_b * scale_c

        # elementwise normalization on row-folded, lane-dense tiles
        cf = k * C
        nf = N // k
        tr_n = tr_s // k
        xf = x2.reshape(nf, cf)                          # contiguous, free reshape
        scale_f = jnp.tile(scale_c, k).reshape(1, cf)
        shift_f = jnp.tile(shift_c, k).reshape(1, cf)
        out_f = pl.pallas_call(
            _normalize_kernel,
            grid=(pl.cdiv(nf, tr_n),),
            in_specs=[
                pl.BlockSpec((tr_n, cf), lambda i: (i, 0)),
                pl.BlockSpec((1, cf), lambda i: (0, 0)),
                pl.BlockSpec((1, cf), lambda i: (0, 0)),
            ],
            out_specs=pl.BlockSpec((tr_n, cf), lambda i: (i, 0)),
            out_shape=jax.ShapeDtypeStruct((nf, cf), x.dtype),
            compiler_params=pltpu.CompilerParams(
                dimension_semantics=("parallel",),
                vmem_limit_bytes=_VMEM_LIMIT_BYTES),
        )(xf, scale_f, shift_f)
        out = out_f.reshape(T, B, C)

    if shaped_input:
        out = out[0]

    # Running-stat update (buffer side effect in PyTorch) — returned functionally.
    mean = s / n
    sumvar = ss - s * mean
    unbias_var = sumvar / jnp.maximum(n - 1.0, 1.0)      # reference asserts n > 1
    new_rm = (1.0 - momentum) * running_mean + momentum * mean
    new_rv = (1.0 - momentum) * running_var + momentum * unbias_var
    return out, new_rm, new_rv


# --------------------------------------------------------------------------- #
# reference + tests
# --------------------------------------------------------------------------- #

def _reference(x, pad_mask, weight, bias, eps=1e-5):
    """Pure-JAX reference matching the PyTorch forward (training path)."""
    T, B, C = x.shape
    if pad_mask is None:
        valid = jnp.ones((T, B, 1), jnp.float32)
    else:
        valid = jnp.logical_not(pad_mask).T.astype(jnp.float32)[:, :, None]
    xf = x.astype(jnp.float32)
    n = valid.sum()
    s = (xf * valid).sum(axis=(0, 1))
    ss = (xf * xf * valid).sum(axis=(0, 1))
    mean = s / n
    sumvar = ss - s * mean
    bias_var = sumvar / n
    unbias_var = sumvar / (n - 1.0)
    inv_std = jnp.maximum(bias_var, eps) ** -0.5
    out = (xf - mean) * (inv_std * weight) + bias
    return out, mean, unbias_var


def _quantize(x):
    # Multiples of 1/4 in [-3, 3]: exact in bf16/f32 and under any MXU f32 mode,
    # so the masked sums are exact and the check stays tight.
    return jnp.clip(jnp.round(x * 4.0) / 4.0, -3.0, 3.0)


if __name__ == "__main__":
    key = jax.random.PRNGKey(0)
    kx, kw, ky = jax.random.split(key, 3)

    # Small case: T x B x C = 8 x 2 x 32.
    T, B, C = 8, 2, 32
    x = _quantize(jax.random.normal(kx, (T, B, C), jnp.float32))
    weight = jax.random.uniform(kw, (C,), jnp.float32)   # per reset_parameters
    bias = jnp.zeros((C,), jnp.float32)
    running_mean = jnp.zeros((C,), jnp.float32)
    running_var = jnp.ones((C,), jnp.float32)
    pad_mask = jnp.zeros((B, T), dtype=bool).at[1, 5:].set(True)

    ref, ref_mean, ref_uvar = _reference(x, pad_mask, weight, bias)

    # 1) fused single-pass path (default for small inputs).
    out, new_rm, new_rv = mask_batch_norm(
        x, pad_mask, weight, bias, running_mean, running_var)
    jax.block_until_ready(out)
    assert jnp.allclose(out, ref, rtol=1e-4, atol=1e-4), "fused: output mismatch"
    assert jnp.allclose(new_rm, 0.9 * running_mean + 0.1 * ref_mean,
                        rtol=1e-4, atol=1e-4), "fused: running_mean mismatch"
    assert jnp.allclose(new_rv, 0.9 * running_var + 0.1 * ref_uvar,
                        rtol=1e-4, atol=1e-4), "fused: running_var mismatch"

    # 2) tiled two-pass path forced on the small case (lane folding, tiny full blocks).
    out_t, _, _ = mask_batch_norm(
        x, pad_mask, weight, bias, running_mean, running_var, max_fused_bytes=0)
    jax.block_until_ready(out_t)
    assert jnp.allclose(out_t, ref, rtol=1e-4, atol=1e-4), "tiled small: mismatch"

    # 3) no-mask path.
    out_nm, _, _ = mask_batch_norm(
        x, None, weight, bias, running_mean, running_var)
    jax.block_until_ready(out_nm)
    ref_nm, _, _ = _reference(x, None, weight, bias)
    assert jnp.allclose(out_nm, ref_nm, rtol=1e-4, atol=1e-4), "no-mask: mismatch"

    # 4) medium ragged case, tiled path with a partial last tile (N = 385, C = 256).
    T2, B2, C2 = 77, 5, 256
    x2 = _quantize(jax.random.normal(ky, (T2, B2, C2), jnp.float32))
    w2 = jax.random.uniform(kw, (C2,), jnp.float32)
    b2 = jnp.zeros((C2,), jnp.float32)
    rm2 = jnp.zeros((C2,), jnp.float32)
    rv2 = jnp.ones((C2,), jnp.float32)
    lens = jnp.array([77, 60, 50, 70, 5])
    pad2 = jnp.arange(T2)[None, :] >= lens[:, None]      # (B2, T2)
    out_m, _, _ = mask_batch_norm(x2, pad2, w2, b2, rm2, rv2, max_fused_bytes=0)
    jax.block_until_ready(out_m)
    ref_m, _, _ = _reference(x2, pad2, w2, b2)
    assert jnp.allclose(out_m, ref_m, rtol=1e-4, atol=1e-4), "tiled ragged: mismatch"

    # 5) bf16 activations end-to-end (stats still accumulate in f32), both paths.
    xb = x2.astype(jnp.bfloat16)
    out_b, _, _ = mask_batch_norm(xb, pad2, w2, b2, rm2, rv2)               # fused
    out_bt, _, _ = mask_batch_norm(xb, pad2, w2, b2, rm2, rv2,
                                   max_fused_bytes=0)                      # tiled
    jax.block_until_ready((out_b, out_bt))
    assert out_b.dtype == jnp.bfloat16 and out_bt.dtype == jnp.bfloat16
    ref_b, _, _ = _reference(xb.astype(jnp.float32), pad2, w2, b2)
    assert jnp.allclose(out_b.astype(jnp.float32), ref_b, rtol=5e-2, atol=5e-2), \
        "bf16 fused: mismatch"
    assert jnp.allclose(out_bt.astype(jnp.float32), ref_b, rtol=5e-2, atol=5e-2), \
        "bf16 tiled: mismatch"

    # 6) shaped_input case: 2-D (B, C) input.
    xs = x.reshape(T * B, C)[:16]
    out_s, _, _ = mask_batch_norm(xs, None, weight, bias, running_mean, running_var)
    jax.block_until_ready(out_s)
    ref_s, _, _ = _reference(xs[None], None, weight, bias)
    assert out_s.shape == xs.shape
    assert jnp.allclose(out_s, ref_s[0], rtol=1e-4, atol=1e-4), "shaped_input: mismatch"

    print("KERNEL_OK")
</pallas_src>

<mosaic_0001>
module attributes {stable_mosaic.version = 11 : i64} {
  func.func @_fused_kernel(%arg0: i32, %arg1: memref<1x16xf32, #tpu.memory_space<vmem>>, %arg2: memref<16x32xf32, #tpu.memory_space<vmem>>, %arg3: memref<1x32xf32, #tpu.memory_space<vmem>>, %arg4: memref<1x32xf32, #tpu.memory_space<vmem>>, %arg5: memref<16x32xf32, #tpu.memory_space<vmem>>, %arg6: memref<1x32xf32, #tpu.memory_space<vmem>>, %arg7: memref<1x32xf32, #tpu.memory_space<vmem>>, %arg8: memref<1x1xf32, #tpu.memory_space<vmem>>) attributes {dimension_semantics = [#tpu.dimension_semantics<arbitrary>], iteration_bounds = array<i64: 1>, scalar_prefetch = 0 : i64, scratch_operands = 0 : i64, tpu.core_type = #tpu.core_type<tc>, window_params = [{pipeline_mode = #tpu.pipeline_mode<synchronous>, transform_indices = @transform_0, window_bounds = array<i64: 1, 16>}, {pipeline_mode = #tpu.pipeline_mode<synchronous>, transform_indices = @transform_1, window_bounds = array<i64: 16, 32>}, {pipeline_mode = #tpu.pipeline_mode<synchronous>, transform_indices = @transform_2, window_bounds = array<i64: 1, 32>}, {pipeline_mode = #tpu.pipeline_mode<synchronous>, transform_indices = @transform_3, window_bounds = array<i64: 1, 32>}, {pipeline_mode = #tpu.pipeline_mode<synchronous>, transform_indices = @transform_4, window_bounds = array<i64: 16, 32>}, {pipeline_mode = #tpu.pipeline_mode<synchronous>, transform_indices = @transform_5, window_bounds = array<i64: 1, 32>}, {pipeline_mode = #tpu.pipeline_mode<synchronous>, transform_indices = @transform_6, window_bounds = array<i64: 1, 32>}, {pipeline_mode = #tpu.pipeline_mode<synchronous>, transform_indices = @transform_7, window_bounds = array<i64: 1, 1>}]} {
    %c0 = arith.constant 0 : index
    %c0_0 = arith.constant 0 : index
    %0 = vector.load %arg2[%c0, %c0_0] : memref<16x32xf32, #tpu.memory_space<vmem>>, vector<16x32xf32>
    %c0_1 = arith.constant 0 : index
    %c0_2 = arith.constant 0 : index
    %1 = vector.load %arg1[%c0_1, %c0_2] : memref<1x16xf32, #tpu.memory_space<vmem>>, vector<1x16xf32>
    %cst = arith.constant dense<0.000000e+00> : vector<1x32xf32>
    %2 = tpu.matmul %1, %0, %cst {dimension_numbers = #tpu.dot_dimension_numbers<[1], [0], [0], [1], [0, 0, 1, 1], [], []>} : vector<1x16xf32>, vector<16x32xf32>, vector<1x32xf32> -> vector<1x32xf32>
    %3 = arith.mulf %0, %0 : vector<16x32xf32>
    %cst_3 = arith.constant dense<0.000000e+00> : vector<1x32xf32>
    %4 = tpu.matmul %1, %3, %cst_3 {dimension_numbers = #tpu.dot_dimension_numbers<[1], [0], [0], [1], [0, 0, 1, 1], [], []>} : vector<1x16xf32>, vector<16x32xf32>, vector<1x32xf32> -> vector<1x32xf32>
    %5 = vector.shape_cast %1 : vector<1x16xf32> to vector<1x1x16xf32>
    %cst_4 = arith.constant dense<0.000000e+00> : vector<1xf32>
    %6 = vector.multi_reduction <add>, %5, %cst_4 [1, 2] : vector<1x1x16xf32> to vector<1xf32>
    %7 = vector.shape_cast %6 : vector<1xf32> to vector<1x1x1xf32>
    %8 = vector.extract %7[0, 0, 0] : f32 from vector<1x1x1xf32>
    %9 = vector.broadcast %8 : f32 to vector<1x1xf32>
    %10 = vector.broadcast %9 : vector<1x1xf32> to vector<1x32xf32>
    %11 = arith.divf %2, %10 : vector<1x32xf32>
    %12 = arith.mulf %2, %11 : vector<1x32xf32>
    %13 = arith.subf %4, %12 : vector<1x32xf32>
    %14 = vector.broadcast %9 : vector<1x1xf32> to vector<1x32xf32>
    %15 = arith.divf %13, %14 : vector<1x32xf32>
    %cst_5 = arith.constant 9.99999974E-6 : f32
    %16 = vector.broadcast %cst_5 : f32 to vector<1x32xf32>
    %17 = arith.maximumf %15, %16 : vector<1x32xf32>
    %18 = math.rsqrt %17 : vector<1x32xf32>
    %c0_6 = arith.constant 0 : index
    %c0_7 = arith.constant 0 : index
    %19 = vector.load %arg3[%c0_6, %c0_7] : memref<1x32xf32, #tpu.memory_space<vmem>>, vector<1x32xf32>
    %20 = arith.mulf %18, %19 : vector<1x32xf32>
    %c0_8 = arith.constant 0 : index
    %c0_9 = arith.constant 0 : index
    %21 = vector.load %arg4[%c0_8, %c0_9] : memref<1x32xf32, #tpu.memory_space<vmem>>, vector<1x32xf32>
    %22 = arith.mulf %11, %20 : vector<1x32xf32>
    %23 = arith.subf %21, %22 : vector<1x32xf32>
    %24 = vector.broadcast %20 : vector<1x32xf32> to vector<16x32xf32>
    %25 = arith.mulf %0, %24 : vector<16x32xf32>
    %26 = vector.broadcast %23 : vector<1x32xf32> to vector<16x32xf32>
    %27 = arith.addf %25, %26 : vector<16x32xf32>
    %c0_10 = arith.constant 0 : index
    %c0_11 = arith.constant 0 : index
    %28 = vector.load %arg5[%c0_10, %c0_11] : memref<16x32xf32, #tpu.memory_space<vmem>>, vector<16x32xf32>
    tpu.vector_store %arg5[%c0_10, %c0_11], %27 {strides = array<i32>} : memref<16x32xf32, #tpu.memory_space<vmem>>, vector<16x32xf32>,
    %c0_12 = arith.constant 0 : index
    %c0_13 = arith.constant 0 : index
    %29 = vector.load %arg6[%c0_12, %c0_13] : memref<1x32xf32, #tpu.memory_space<vmem>>, vector<1x32xf32>
    tpu.vector_store %arg6[%c0_12, %c0_13], %2 {strides = array<i32>} : memref<1x32xf32, #tpu.memory_space<vmem>>, vector<1x32xf32>,
    %c0_14 = arith.constant 0 : index
    %c0_15 = arith.constant 0 : index
    %30 = vector.load %arg7[%c0_14, %c0_15] : memref<1x32xf32, #tpu.memory_space<vmem>>, vector<1x32xf32>
    tpu.vector_store %arg7[%c0_14, %c0_15], %4 {strides = array<i32>} : memref<1x32xf32, #tpu.memory_space<vmem>>, vector<1x32xf32>,
    %c0_16 = arith.constant 0 : index
    %c0_17 = arith.constant 0 : index
    %31 = vector.load %arg8[%c0_16, %c0_17] : memref<1x1xf32, #tpu.memory_space<vmem>>, vector<1x1xf32>
    tpu.vector_store %arg8[%c0_16, %c0_17], %9 {strides = array<i32>} : memref<1x1xf32, #tpu.memory_space<vmem>>, vector<1x1xf32>,
    return
  }
  func.func @transform_0(%arg0: i32) -> (i32, i32) {
    %c0_i32 = arith.constant 0 : i32
    %c0_i32_0 = arith.constant 0 : i32
    %c0_i32_1 = arith.constant 0 : i32
    return %c0_i32, %c0_i32_0 : i32, i32
  }
  func.func @transform_1(%arg0: i32) -> (i32, i32) {
    %c0_i32 = arith.constant 0 : i32
    %c0_i32_0 = arith.constant 0 : i32
    %c0_i32_1 = arith.constant 0 : i32
    return %c0_i32, %c0_i32_0 : i32, i32
  }
  func.func @transform_2(%arg0: i32) -> (i32, i32) {
    %c0_i32 = arith.constant 0 : i32
    %c0_i32_0 = arith.constant 0 : i32
    %c0_i32_1 = arith.constant 0 : i32
    return %c0_i32, %c0_i32_0 : i32, i32
  }
  func.func @transform_3(%arg0: i32) -> (i32, i32) {
    %c0_i32 = arith.constant 0 : i32
    %c0_i32_0 = arith.constant 0 : i32
    %c0_i32_1 = arith.constant 0 : i32
    return %c0_i32, %c0_i32_0 : i32, i32
  }
  func.func @transform_4(%arg0: i32) -> (i32, i32) {
    %c0_i32 = arith.constant 0 : i32
    %c0_i32_0 = arith.constant 0 : i32
    %c0_i32_1 = arith.constant 0 : i32
    return %c0_i32, %c0_i32_0 : i32, i32
  }
  func.func @transform_5(%arg0: i32) -> (i32, i32) {
    %c0_i32 = arith.constant 0 : i32
    %c0_i32_0 = arith.constant 0 : i32
    %c0_i32_1 = arith.constant 0 : i32
    return %c0_i32, %c0_i32_0 : i32, i32
  }
  func.func @transform_6(%arg0: i32) -> (i32, i32) {
    %c0_i32 = arith.constant 0 : i32
    %c0_i32_0 = arith.constant 0 : i32
    %c0_i32_1 = arith.constant 0 : i32
    return %c0_i32, %c0_i32_0 : i32, i32
  }
  func.func @transform_7(%arg0: i32) -> (i32, i32) {
    %c0_i32 = arith.constant 0 : i32
    %c0_i32_0 = arith.constant 0 : i32
    %c0_i32_1 = arith.constant 0 : i32
    return %c0_i32, %c0_i32_0 : i32, i32
  }
}

</mosaic_0001>

<bundles_post_ra>
// kernel: mask_batch_norm.1
= control target key start
LH: loop header
LB: loop body
LE: loop exit
PB: predicated region body
PF: predicated region fallthrough
CT: control target
= control target key end

     0   :  { %13 = vsyncpa [#allocation3], 0  ;;  %vm172_vm0 = vcmask 122880   ;;  %v334_v3 = vmov 0.0   ;;  %s419_s0 = inlined_call_operand.vmem [shape: f32[1,16], index: 0, kind: input, shape index: {}]   ;;  %s420_s1 = inlined_call_operand.vmem [shape: f32[16,32], index: 1, kind: input, shape index: {}]   ;;  %s421_s2 = inlined_call_operand.vmem [shape: f32[1,32], index: 2, kind: input, shape index: {}]   ;;  %s422_s3 = inlined_call_operand.vmem [shape: f32[1,32], index: 3, kind: input, shape index: {}]   ;;  %s423_s4 = inlined_call_operand.hbm [shape: f32[16,32], index: 4, kind: output, shape index: {0}]   ;;  %s424_s5 = inlined_call_operand.vmem [shape: f32[1,32], index: 5, kind: output, shape index: {1}]   ;;  %s425_s6 = inlined_call_operand.vmem [shape: f32[1,32], index: 6, kind: output, shape index: {2}]   ;;  %s426_s7 = inlined_call_operand.hbm [shape: f32[1,1], index: 7, kind: output, shape index: {3}]  }
   0x1   :  { %v25_v0 = vld [vmem:[%s419_s0] sm:$0x1]  ;;  %v386_v1 = vld [vmem:[%s420_s1 + $0x8] sm:$0xff]  ;;  %264 = vmatprep.subr.mxu0 %v334_v3  ;;  %271 = vmatprep.subr.mxu1 %v334_v3 }
   0x2   :  { %v173_v2 = vsel %vm172_vm0, %v25_v0, 0.0  ;;  %v391_v4 = vld [vmem:[%s420_s1] sm:$0xff]  ;;  %v101_v5 = vmul.f32 %v386_v1, %v386_v1 }
   0x3   :  { %14 = vsyncpa [#allocation5], 0  ;;  %174 = vadd.xlane.f32.xlu0 %v173_v2  ;;  %265 = vmatpush3.msra.mxu0 %v386_v1  ;;  %vm26_vm1 = vcmask 130048   ;;  %v100_v6 = vmul.f32 %v391_v4, %v391_v4  ;;  %vm335_vm2 = vmmov 0   ;;  %vm213_vm3 = vcmask 253952   ;;  %s336_s30 = smov [#allocation4]  }
   0x4   :  { %266 = vmatprep.subr.mxu0 %v334_v3  ;;  %268 = vmatprep.mubr.msk.f32.mxu0 %vm335_vm2, %v334_v3  ;;  %s240_s8 = sshll.u32 %s336_s30, 4  ;;  %vm216_vm4 = vcmask 0   ;;  %s241_s8 = int_to_ptr.vmem [resolvable:$true] %s240_s8 }
   0x5   :  { %267 = vmatpush3.msra.mxu0 %v391_v4  ;;  %272 = vmatpush3.msra.mxu1 %v101_v5  ;;  %s290_s12 = scalar_lea.vmem %s241_s8, 16  ;;  %s294_s13 = scalar_lea.vmem %s241_s8, 32 }
   0x6   :  { %269 = vmatmul.mubr.msk.f32.vlgmr.msra.gmra.mxu0 %vm26_vm1, %v25_v0  ;;  %273 = vmatprep.subr.mxu1 %v334_v3  ;;  %p291_p0 = scmp.ne.s32.totalorder %s241_s8, %s290_s12  ;;  %p295_p1 = scmp.lt.s32.totalorder %s241_s8, %s241_s8 }
   0x7   :  { %274 = vmatpush3.msra.mxu1 %v100_v6  ;;  %275 = vmatprep.mubr.msk.f32.mxu1 %vm335_vm2, %v334_v3  ;;  %p296_p2 = scmp.lt.s32.totalorder %s294_s13, %s290_s12 }
   0x8   :  { %276 = vmatmul.mubr.msk.f32.vlgmr.msra.gmra.mxu1 %vm26_vm1, %v25_v0 }
   0x9   :  { %p297_p3 = por %p296_p2, %p295_p1 }
   0xb   :  { %p298_p4 = pnand %p297_p3, %p291_p0 }
  0x8c   :  { %v175_v7 = vpop.xlane.xlu0 %174 }
  0x8d   :  { %v176_v8 = vrot.slane %v175_v7, 4 }
  0x8f   :  { %v177_v9 = vadd.f32 %v176_v8, %v175_v7 }
  0x91   :  { %v178_v10 = vrot.slane %v177_v9, 2 }
  0x93   :  { %v179_v11 = vadd.f32 %v178_v10, %v177_v9 }
  0x95   :  { %v180_v12 = vrot.slane %v179_v11, 1 }
  0x97   :  { %v181_v13 = vadd.f32 %v180_v12, %v179_v11 }
  0x99   :  { %278 = vpush %v181_v13 }
  0xc6   :  { %v96_v14 = vpop.f32.mrf.mxu0 }
  0xc7   :  { %214 = vst.msk [vmem:[%s424_s5] sm:$0x1] %vm213_vm3, %v96_v14 }
  0xc8   :  { %v270_v15 = vpop.f32.mrf.mxu0  ;;  %v168_v16 = vpop.f32.mrf.mxu1 }
  0xc9   :  { %215 = vst.msk [vmem:[%s425_s6] sm:$0x1] %vm213_vm3, %v168_v16 }
  0xca   :  { %s279_s11 = spop %278  ;;  %v277_v17 = vpop.f32.mrf.mxu1 }
  0xcb   :  { %v183_v18 = vstv %s279_s11 }
  0xcc   :  { %286 = vrcp.f32 %v183_v18  ;;  %217 = vst.msk [vmem:[#allocation4] sm:$0x1] %vm216_vm4, %v183_v18 }
  0xcd   :  { %301 = shalt.err (!%p298_p4)
}
  0xce   :  { %243 = dma.vmem_to_hbm [thread:$0]  %s241_s8, 16, %s426_s7, [#allocation5]   ;;  %v196_v25 = vlaneseq  ;;  %v191_v27 = vld [vmem:[%s421_s2] sm:$0x1]  ;;  %vm210_vm5 = vcmask 261120  }
  0xcf   :  { %v193_v31 = vld [vmem:[%s422_s3] sm:$0x1]  ;;  %s337_s7 = smov [#allocation2]  }
  0xd0   :  { %v197_v26 = vshrl.u32 %v196_v25, 7  ;;  %s223_s18 = sshll.u32 %s337_s7, 4  ;;  %s224_s18 = int_to_ptr.vmem [resolvable:$true] %s223_s18 }
  0xd1   :  { %s310_s2 = scalar_lea.vmem %s224_s18, 256  ;;  %p315_p6 = scmp.lt.s32.totalorder %s224_s18, %s224_s18 }
  0xd2   :  { %v198_v28 = vsub.s32 0, %v197_v26  ;;  %p311_p5 = scmp.ne.s32.totalorder %s224_s18, %s310_s2  ;;  %p316_p7 = scmp.lt.s32.totalorder %s310_s2, %s310_s2 }
  0xd4   :  { %p317_p8 = por %p316_p7, %p315_p6 }
  0xd6   :  { %p318_p9 = pnand %p317_p8, %p311_p5 }
  0xd9   :  { %v287_v19 = vpop.eup %286 }
  0xda   :  { %v185_v20 = vmul.f32 %v287_v19, %v96_v14 }
  0xdc   :  { %v186_v21 = vmul.f32 %v185_v20, %v96_v14 }
  0xde   :  { %v187_v22 = vsub.f32 %v168_v16, %v186_v21 }
  0xe0   :  { %v188_v23 = vmul.f32 %v287_v19, %v187_v22 }
  0xe2   :  { %v189_v24 = vmax.f32 %v188_v23, 1e-05 }
  0xe4   :  { %288 = vrsqrt.f32 %v189_v24 }
  0xf1   :  { %v289_v29 = vpop.eup %288 }
  0xf2   :  { %v192_v30 = vmul.f32 %v289_v29, %v191_v27 }
  0xf4   :  { %v194_v32 = vmul.f32 %v192_v30, %v185_v20  ;;  %v199_v33 = vrot.slane %v192_v30, %v198_v28 }
  0xf6   :  { %v195_v34 = vsub.f32 %v193_v31, %v194_v32  ;;  %v200_v35 = vmul.f32 %v199_v33, %v391_v4  ;;  %v201_v36 = vmul.f32 %v199_v33, %v386_v1 }
  0xf8   :  { %v206_v37 = vrot.slane %v195_v34, %v198_v28 }
  0xfa   :  { %v208_v38 = vadd.f32 %v206_v37, %v200_v35  ;;  %v209_v39 = vadd.f32 %v206_v37, %v201_v36 }
  0xfc   :  { %211 = vst.msk [vmem:[#allocation2] sm:$0xff] %vm210_vm5, %v208_v38  ;;  %212 = vst.msk [vmem:[#allocation2 + $0x8] sm:$0xff] %vm210_vm5, %v209_v39 }
  0xfd   :  { %321 = shalt.err (!%p318_p9)
}
  0xfe   :  { %s338_s3 = smov 128   ;;  %s339_s19 = smov 8  }
  0xff   :  { %229 = dma.vmem_to_hbm [thread:$0]  %s224_s18, 256, %s423_s4, [#allocation3], %s338_s3, %s338_s3, %s339_s19  }
 0x100   :  { %330 = dma.done.wait [#allocation3], 256  }
 0x101   :  { %331 = vsyncadd [#allocation3], 4294967040 }
 0x102   :  { %332 = dma.done.wait [#allocation5], 16  }
 0x103   :  { %333 = vsyncadd [#allocation5], 4294967280 }
 0x104   :  { %254 = vsyncpa [#allocation3], 1 }
 0x105   :  { %255 = vsyncpa [#allocation5], 1 }

</bundles_post_ra>
